<compile_context>
chip_gen: v6e
topology: v6e:2x2x1
jax: 0.10.0
libtpu: 0.0.40
codegen_flags: <defaults>
</compile_context>

<pallas_src>
import functools

import jax
import jax.numpy as jnp
from jax import lax
from jax.experimental import pallas as pl
from jax.experimental.pallas import tpu as pltpu


def _round_up(a: int, b: int) -> int:
    return ((a + b - 1) // b) * b


def _cdiv(a: int, b: int) -> int:
    return (a + b - 1) // b


def _mlp_kernel(x_ref, w1_ref, b1_ref, w2_ref, b2_ref, o_ref, *, approximate):
    # x_ref: (NB, C_in, tm) block; pixels on the lane axis.
    w1 = w1_ref[...]            # (C_mid, C_in)
    b1 = b1_ref[...]            # (C_mid, 1) -> broadcasts over lanes
    w2 = w2_ref[...]            # (C_out, C_mid), pre-scaled by 0.5 in the wrapper
    b2 = b2_ref[...]            # (C_out, 1)
    nb = x_ref.shape[0]

    def body(i, carry):
        x = x_ref[i]                                            # (C_in, tm)
        # mlp1: (C_mid, C_in) @ (C_in, tm) -> (C_mid, tm), f32 accumulate.
        h = jnp.dot(w1, x, preferred_element_type=jnp.float32,
                    precision=lax.Precision.HIGHEST)
        h = h + b1
        if approximate:
            # tanh-approx GELU (torch approximate='tanh'); tanh runs on the EUP
            # slot, cutting VALU work.  0.5 is already folded into w2.
            inner = 0.7978845608028654 * (h + 0.044715 * (h * h * h))
            h = h * (1.0 + jnp.tanh(inner))
        else:
            # Exact erf GELU, matching torch.nn.GELU() default; 0.5 folded into w2.
            h = h * (1.0 + lax.erf(h * 0.7071067811865476))
        # mlp2: (C_out, C_mid) @ (C_mid, tm) -> (C_out, tm), f32 accumulate.
        y = jnp.dot(w2, h, preferred_element_type=jnp.float32,
                    precision=lax.Precision.HIGHEST)
        y = y + b2
        o_ref[i] = y.astype(o_ref.dtype)                        # lane-dense store
        return carry

    # Unrolled short fixed-trip loop (LLO-visible); nb is a static block dim.
    lax.fori_loop(0, nb, body, 0, unroll=True)


def _choose_tiles(N, C_in, C_mid, C_out, HW, itemsize, *, tm_max, nb_max,
                  target_step_px, vmem_budget):
    """Pick (batch_block, lane_tile) maximizing per-step HBM traffic under a
    VMEM budget, keeping the lane tile a multiple of 128."""
    hw_pad = _round_up(HW, 128)
    tm = min(_round_up(tm_max, 128), hw_pad)

    def step_bytes(nb, t):
        io = 2 * itemsize * nb * t * (C_in + C_out)      # double-buffered x/out tiles
        inter = 4 * nb * t * (C_mid + C_out)             # f32 intermediates h, y
        wts = 4 * 2 * (C_mid * C_in + C_out * C_mid + C_mid + C_out)
        return io + inter + wts

    # Shrink the lane tile until a single-batch step fits the budget.
    while tm > 128 and step_bytes(1, tm) > vmem_budget:
        tm = max(128, _round_up(tm // 2, 128))

    # Grow the batch block until the per-step pixel count is large enough.
    nb = 1
    while (nb < min(N, nb_max) and nb * tm < target_step_px
           and step_bytes(nb + 1, tm) <= vmem_budget):
        nb += 1

    # Keep at least 2 grid steps when the problem allows it (v7x has 2 TCs).
    while nb > 1 and _cdiv(N, nb) * _cdiv(HW, tm) < 2:
        nb -= 1
    return nb, tm


@functools.partial(jax.jit,
                   static_argnames=("tm_max", "nb_max", "approximate"))
def mlp_forward(x_nchw, w1, b1, w2, b2, *, tm_max=32768, nb_max=8,
                approximate=False):
    """Forward pass of the 1x1-conv MLP.

    Args:
      x_nchw: (N, C_in, H, W) input (PyTorch NCHW convention).
      w1: (C_mid, C_in)  -- mlp1 Conv2d weight with the trailing 1x1 squeezed.
      b1: (C_mid,)       -- mlp1 bias.
      w2: (C_out, C_mid) -- mlp2 Conv2d weight (squeezed).
      b2: (C_out,)       -- mlp2 bias.
      tm_max: upper bound on the lane (pixel) tile.
      nb_max: upper bound on the batch block per grid step.
      approximate: use the tanh-approx GELU (torch approximate='tanh') instead
        of the exact erf GELU.  Default False (matches torch.nn.GELU()).
    Returns:
      (N, C_out, H, W) output, identical semantics to the torch module.
    """
    N, C_in, H, W = x_nchw.shape
    C_mid = w1.shape[0]
    C_out = w2.shape[0]
    HW = H * W

    # Channel-major, per-batch flattening: pure reshape, no transpose, no pad.
    x_flat = x_nchw.reshape(N, C_in, HW)

    nb, tm = _choose_tiles(
        N, C_in, C_mid, C_out, HW, jnp.dtype(x_nchw.dtype).itemsize,
        tm_max=tm_max, nb_max=nb_max,
        target_step_px=32768,            # ~0.5-1 MiB of x traffic per step at C_in=4 f32
        vmem_budget=24 * 1024 * 1024)    # fits v7x's 64 MiB VMEM with headroom
    grid = (_cdiv(N, nb), _cdiv(HW, tm))

    b1_2d = b1.reshape(C_mid, 1)
    b2_2d = b2.reshape(C_out, 1)
    # Fold the GELU's 0.5 factor into W2 (exact):  W2 @ (0.5*g) == (0.5*W2) @ g.
    w2_scaled = (0.5 * w2).astype(w2.dtype)

    kernel = functools.partial(_mlp_kernel, approximate=approximate)

    out_flat = pl.pallas_call(
        kernel,
        out_shape=jax.ShapeDtypeStruct((N, C_out, HW), x_nchw.dtype),
        grid_spec=pltpu.PrefetchScalarGridSpec(
            num_scalar_prefetch=0,
            grid=grid,
            in_specs=[
                pl.BlockSpec((nb, C_in, tm), lambda b, t: (b, 0, t)),   # x tile
                pl.BlockSpec((C_mid, C_in), lambda b, t: (0, 0)),       # w1 (resident)
                pl.BlockSpec((C_mid, 1), lambda b, t: (0, 0)),          # b1 (resident)
                pl.BlockSpec((C_out, C_mid), lambda b, t: (0, 0)),      # w2 (resident)
                pl.BlockSpec((C_out, 1), lambda b, t: (0, 0)),          # b2 (resident)
            ],
            out_specs=pl.BlockSpec((nb, C_out, tm), lambda b, t: (b, 0, t)),
        ),
        compiler_params=pltpu.CompilerParams(
            # Both axes independent -> megacore sharding on v7x.
            dimension_semantics=("parallel", "parallel"),
            vmem_limit_bytes=32 * 1024 * 1024,
        ),
    )(x_flat, w1, b1_2d, w2_scaled, b2_2d)

    return out_flat.reshape(N, C_out, H, W)


def mlp_reference(x_nchw, w1, b1, w2, b2):
    """Pure-JAX reference with identical semantics (sanity check)."""
    h = jnp.einsum("nchw,mc->nmhw", x_nchw, w1,
                   precision=lax.Precision.HIGHEST) + b1[None, :, None, None]
    h = 0.5 * h * (1.0 + lax.erf(h / jnp.sqrt(2.0)))
    y = jnp.einsum("nmhw,om->nohw", h, w2,
                   precision=lax.Precision.HIGHEST) + b2[None, :, None, None]
    return y


if __name__ == "__main__":
    # Module hyperparameters (synthetic, deterministic)
    N, C_in, H, W = 2, 4, 16, 16
    C_mid, C_out = 32, 4

    key = jax.random.PRNGKey(0)
    k_x, k_w1, k_b1, k_w2, k_b2 = jax.random.split(key, 5)

    x = jax.random.normal(k_x, (N, C_in, H, W), dtype=jnp.float32)

    # nn.Conv2d(in, mid, 1).weight has shape (mid, in, 1, 1); we store the
    # squeezed (mid, in) matrix directly (natural torch layout).
    w1 = jax.random.normal(k_w1, (C_mid, C_in), dtype=jnp.float32) * 0.1
    b1 = jax.random.normal(k_b1, (C_mid,), dtype=jnp.float32) * 0.1
    w2 = jax.random.normal(k_w2, (C_out, C_mid), dtype=jnp.float32) * 0.1
    b2 = jax.random.normal(k_b2, (C_out,), dtype=jnp.float32) * 0.1

    out = jax.block_until_ready(mlp_forward(x, w1, b1, w2, b2))
    ref = jax.block_until_ready(mlp_reference(x, w1, b1, w2, b2))

    assert out.shape == (N, C_out, H, W), out.shape
    assert jnp.allclose(out, ref, atol=1e-5, rtol=1e-5), (
        float(jnp.max(jnp.abs(out - ref)))
    )

    print("KERNEL_OK")
</pallas_src>

<mosaic_0001>
module attributes {stable_mosaic.version = 11 : i64} {
  func.func @_mlp_kernel(%arg0: i32, %arg1: i32, %arg2: memref<1x4x256xf32, #tpu.memory_space<vmem>>, %arg3: memref<32x4xf32, #tpu.memory_space<vmem>>, %arg4: memref<32x1xf32, #tpu.memory_space<vmem>>, %arg5: memref<4x32xf32, #tpu.memory_space<vmem>>, %arg6: memref<4x1xf32, #tpu.memory_space<vmem>>, %arg7: memref<1x4x256xf32, #tpu.memory_space<vmem>>) attributes {dimension_semantics = [#tpu.dimension_semantics<parallel>, #tpu.dimension_semantics<parallel>], iteration_bounds = array<i64: 2, 1>, scalar_prefetch = 0 : i64, scratch_operands = 0 : i64, tpu.core_type = #tpu.core_type<tc>, window_params = [{transform_indices = @transform_0, window_bounds = array<i64: 1, 4, 256>}, {pipeline_mode = #tpu.pipeline_mode<synchronous>, transform_indices = @transform_1, window_bounds = array<i64: 32, 4>}, {pipeline_mode = #tpu.pipeline_mode<synchronous>, transform_indices = @transform_2, window_bounds = array<i64: 32, 1>}, {pipeline_mode = #tpu.pipeline_mode<synchronous>, transform_indices = @transform_3, window_bounds = array<i64: 4, 32>}, {pipeline_mode = #tpu.pipeline_mode<synchronous>, transform_indices = @transform_4, window_bounds = array<i64: 4, 1>}, {transform_indices = @transform_5, window_bounds = array<i64: 1, 4, 256>}]} {
    %c0 = arith.constant 0 : index
    %c0_0 = arith.constant 0 : index
    %0 = vector.load %arg3[%c0, %c0_0] : memref<32x4xf32, #tpu.memory_space<vmem>>, vector<32x4xf32>
    %c0_1 = arith.constant 0 : index
    %c0_2 = arith.constant 0 : index
    %1 = vector.load %arg4[%c0_1, %c0_2] : memref<32x1xf32, #tpu.memory_space<vmem>>, vector<32x1xf32>
    %c0_3 = arith.constant 0 : index
    %c0_4 = arith.constant 0 : index
    %2 = vector.load %arg5[%c0_3, %c0_4] : memref<4x32xf32, #tpu.memory_space<vmem>>, vector<4x32xf32>
    %c0_5 = arith.constant 0 : index
    %c0_6 = arith.constant 0 : index
    %3 = vector.load %arg6[%c0_5, %c0_6] : memref<4x1xf32, #tpu.memory_space<vmem>>, vector<4x1xf32>
    %c0_i32 = arith.constant 0 : i32
    %4 = arith.index_cast %c0_i32 : i32 to index
    %c0_7 = arith.constant 0 : index
    %c0_8 = arith.constant 0 : index
    %5 = vector.load %arg2[%4, %c0_7, %c0_8] : memref<1x4x256xf32, #tpu.memory_space<vmem>>, vector<1x4x256xf32>
    %6 = vector.shape_cast %5 : vector<1x4x256xf32> to vector<4x256xf32>
    %cst = arith.constant dense<0.000000e+00> : vector<32x256xf32>
    %7 = tpu.matmul %0, %6, %cst {dimension_numbers = #tpu.dot_dimension_numbers<[1], [0], [0], [1], [0, 0, 1, 1], [], []>, precision = #tpu.contract_precision<fp32>} : vector<32x4xf32>, vector<4x256xf32>, vector<32x256xf32> -> vector<32x256xf32>
    %8 = vector.broadcast %1 : vector<32x1xf32> to vector<32x256xf32>
    %9 = arith.addf %7, %8 : vector<32x256xf32>
    %cst_9 = arith.constant 0.707106769 : f32
    %10 = vector.broadcast %cst_9 : f32 to vector<32x256xf32>
    %11 = arith.mulf %9, %10 : vector<32x256xf32>
    %12 = math.erf %11 : vector<32x256xf32>
    %cst_10 = arith.constant 1.000000e+00 : f32
    %13 = vector.broadcast %cst_10 : f32 to vector<32x256xf32>
    %14 = arith.addf %13, %12 : vector<32x256xf32>
    %15 = arith.mulf %9, %14 : vector<32x256xf32>
    %cst_11 = arith.constant dense<0.000000e+00> : vector<4x256xf32>
    %16 = tpu.matmul %2, %15, %cst_11 {dimension_numbers = #tpu.dot_dimension_numbers<[1], [0], [0], [1], [0, 0, 1, 1], [], []>, precision = #tpu.contract_precision<fp32>} : vector<4x32xf32>, vector<32x256xf32>, vector<4x256xf32> -> vector<4x256xf32>
    %17 = vector.broadcast %3 : vector<4x1xf32> to vector<4x256xf32>
    %18 = arith.addf %16, %17 : vector<4x256xf32>
    %19 = arith.index_cast %c0_i32 : i32 to index
    %c0_12 = arith.constant 0 : index
    %c0_13 = arith.constant 0 : index
    %20 = vector.load %arg7[%19, %c0_12, %c0_13] : memref<1x4x256xf32, #tpu.memory_space<vmem>>, vector<1x4x256xf32>
    %21 = vector.shape_cast %20 : vector<1x4x256xf32> to vector<4x256xf32>
    %22 = vector.shape_cast %18 : vector<4x256xf32> to vector<1x4x256xf32>
    tpu.vector_store %arg7[%19, %c0_12, %c0_13], %22 {strides = array<i32>} : memref<1x4x256xf32, #tpu.memory_space<vmem>>, vector<1x4x256xf32>,
    %c1_i32 = arith.constant 1 : i32
    return
  }
  func.func @transform_0(%arg0: i32, %arg1: i32) -> (i32, i32, i32) {
    %c0_i32 = arith.constant 0 : i32
    %c0_i32_0 = arith.constant 0 : i32
    return %arg0, %c0_i32, %arg1 : i32, i32, i32
  }
  func.func @transform_1(%arg0: i32, %arg1: i32) -> (i32, i32) {
    %c0_i32 = arith.constant 0 : i32
    %c0_i32_0 = arith.constant 0 : i32
    %c0_i32_1 = arith.constant 0 : i32
    return %c0_i32, %c0_i32_0 : i32, i32
  }
  func.func @transform_2(%arg0: i32, %arg1: i32) -> (i32, i32) {
    %c0_i32 = arith.constant 0 : i32
    %c0_i32_0 = arith.constant 0 : i32
    %c0_i32_1 = arith.constant 0 : i32
    return %c0_i32, %c0_i32_0 : i32, i32
  }
  func.func @transform_3(%arg0: i32, %arg1: i32) -> (i32, i32) {
    %c0_i32 = arith.constant 0 : i32
    %c0_i32_0 = arith.constant 0 : i32
    %c0_i32_1 = arith.constant 0 : i32
    return %c0_i32, %c0_i32_0 : i32, i32
  }
  func.func @transform_4(%arg0: i32, %arg1: i32) -> (i32, i32) {
    %c0_i32 = arith.constant 0 : i32
    %c0_i32_0 = arith.constant 0 : i32
    %c0_i32_1 = arith.constant 0 : i32
    return %c0_i32, %c0_i32_0 : i32, i32
  }
  func.func @transform_5(%arg0: i32, %arg1: i32) -> (i32, i32, i32) {
    %c0_i32 = arith.constant 0 : i32
    %c0_i32_0 = arith.constant 0 : i32
    return %arg0, %c0_i32, %arg1 : i32, i32, i32
  }
}

</mosaic_0001>

<bundles_post_ra>
// kernel: mlp_forward.1
= control target key start
LH: loop header
LB: loop body
LE: loop exit
PB: predicated region body
PF: predicated region fallthrough
CT: control target
= control target key end

     0   :  { %s1717_s18 = smov 0   ;;  %s1719_s19 = smov 0   ;;  %s1973_s0 = inlined_call_operand.vmem [shape: f32[2,4,256], index: 0, kind: input, shape index: {}]   ;;  %s1974_s1 = inlined_call_operand.vmem [shape: f32[32,4], index: 1, kind: input, shape index: {}]   ;;  %s1975_s2 = inlined_call_operand.vmem [shape: f32[32,1], index: 2, kind: input, shape index: {}]   ;;  %s1976_s3 = inlined_call_operand.vmem [shape: f32[4,32], index: 3, kind: input, shape index: {}]   ;;  %s1977_s4 = inlined_call_operand.vmem [shape: f32[4,1], index: 4, kind: input, shape index: {}]   ;;  %s1978_s5 = inlined_call_operand.vmem [shape: f32[2,4,256], index: 5, kind: output, shape index: {}]  }
   0x1   :  { %s1721_s20 = smov 0  }
   0x2 LB: > { %s27_s21 = sadd.s32 1, %s1679_s19  ;;  %p1607_p0 = scmp.ge.s32.totalorder %s1683_s20, 1  ;;  %s1683_s20 = sphi %s1721_s20, %s15_s20   ;;  %s1679_s19 = sphi %s1719_s19, %s1980_s19   ;;  %s1675_s18 = sphi %s1717_s18, %s1979_s18  }
   0x3   : > { %p29_p1 = scmp.ge.s32.totalorder %s27_s21, 2  ;;  %p208_p2 = scmp.lt.s32.totalorder %s1683_s20, 3 }
   0x5   : > { %s1982_s21 = smov (%p29_p1, %s27_s21), 0  ;;  %p209_p3 = pnand %p1607_p0, %p208_p2 }
   0x6   : > { %p245_p4 = scmp.lt.s32.totalorder (!%p209_p3), %s1675_s18, 1 }
   0x7   : > { %212 = sbr.rel (%p209_p3) target bundleno = 530 (0x212), region = 40 }
   0xc   : > { %v264_v0 = vld [vmem:[%s1974_s1] sm:$0xff]  ;;  %vm297_vm0 = vcmask 31744   ;;  %v265_v1 = vld [vmem:[%s1974_s1 + $0x8] sm:$0xff]  ;;  %v1685_v2 = vmov 0.0   ;;  %v266_v5 = vld [vmem:[%s1974_s1 + $0x10] sm:$0xff]  ;;  %s1984_s18 = smov (!%p245_p4, %s1675_s18), 1 }
   0xd   : > { %381 = vmatprep.mubr.f32.mxu0 %v1685_v2  ;;  %v299_v3 = vsel %vm297_vm0, %v264_v0, 0  ;;  %v302_v4 = vsel %vm297_vm0, %v265_v1, 0  ;;  %500 = vmatprep.mubr.f32.mxu1 %v1685_v2  ;;  %v267_v6 = vld [vmem:[%s1974_s1 + $0x18] sm:$0xff]  ;;  %v269_v7 = vld [vmem:[%s1975_s2 + $0x8] sm:$0xff]  ;;  %v305_v10 = vsel %vm297_vm0, %v266_v5, 0  ;;  %v1686_v12 = vmov 0  }
   0xe   : > { %v1754_v8 = vand.u32 4294901760, %v299_v3  ;;  %v1756_v9 = vand.u32 4294901760, %v302_v4  ;;  %v308_v11 = vsel %vm297_vm0, %v267_v6, 0  ;;  %1643 = vset.pattern.permute.xlu1 %v1686_v12  ;;  %1642 = vset.pattern.permute.xlu0 %v1686_v12  ;;  %v1758_v13 = vand.u32 4294901760, %v305_v10  ;;  %v271_v14 = vld [vmem:[%s1975_s2 + $0x18] sm:$0xff]  ;;  %s1614_s9 = sshll.u32 %s1984_s18, 3 }
   0xf   : > { %282 = vperm.xlu1 %1643, %v269_v7   ;;  %vm310_vm1 = vcmask 1043456   ;;  %v268_v17 = vld [vmem:[%s1975_s2] sm:$0xff]  ;;  %292 = vperm.xlu0 %1642, %v271_v14   ;;  %s252_s14 = scalar_lea.vmem %s1973_s0, %s1614_s9  ;;  %v1781_v19 = vand.u32 4294901760, %v308_v11  ;;  %v270_v20 = vld [vmem:[%s1975_s2 + $0x10] sm:$0xff]  ;;  %vm964_vm2 = vcmask 261120   ;;  %s262_s27 = scalar_lea.vmem %s1978_s5, %s1614_s9 }
  0x10   : > { %v1765_v15 = vsub.f32 %v299_v3, %v1754_v8  ;;  %v1768_v16 = vsub.f32 %v302_v4, %v1756_v9  ;;  %v1779_v18 = vsub.f32 %v305_v10, %v1758_v13  ;;  %v274_v21 = vld [vmem:[%s252_s14] sm:$0xff] }
  0x11   : > { %v296_v24 = vcombine.high %v274_v21, %v274_v21  ;;  %v311_v25 = vsel %vm310_vm1, %v274_v21, 0  ;;  %v1793_v30 = vsub.f32 %v308_v11, %v1781_v19  ;;  %v273_v31 = vld [vmem:[%s1977_s4] sm:$0xf] }
  0x12   : > { %v384_v22 = vand.u32 4294901760, %v1765_v15  ;;  %v395_v23 = vand.u32 4294901760, %v1768_v16  ;;  %v347_v26 = vand.u32 4294901760, %v311_v25  ;;  %v406_v29 = vand.u32 4294901760, %v1779_v18 }
  0x13   : > { %277 = vperm.xlu1 %1643, %v268_v17   ;;  %287 = vperm.xlu0 %1642, %v270_v20   ;;  %v313_v28 = vsel %vm310_vm1, %v296_v24, 0  ;;  %v417_v38 = vand.u32 4294901760, %v1793_v30 }
  0x14   : > { %v385_v27 = vsub.f32 %v1765_v15, %v384_v22  ;;  %v345_v32 = vand.u32 4294901760, %v313_v28  ;;  %v396_v34 = vsub.f32 %v1768_v16, %v395_v23  ;;  %v463_v35 = vsub.f32 %v311_v25, %v347_v26 }
  0x15   : > { %v407_v42 = vsub.f32 %v1779_v18, %v406_v29  ;;  %v418_v47 = vsub.f32 %v1793_v30, %v417_v38 }
  0x16   : > { %v386_v33 = vand.u32 4294901760, %v385_v27  ;;  %346 = vmatprep.subr.mxu0 %v345_v32  ;;  %v457_v36 = vsub.f32 %v313_v28, %v345_v32  ;;  %v464_v37 = vand.u32 4294901760, %v463_v35  ;;  %v397_v39 = vand.u32 4294901760, %v396_v34 }
  0x17   : > { %961 = vperm.xlu0 %1642, %v273_v31   ;;  %348 = vmatpush1.msra.mxu0 %v347_v26  ;;  %v408_v46 = vand.u32 4294901760, %v407_v42  ;;  %v419_v48 = vand.u32 4294901760, %v418_v47 }
  0x18   : > { %387 = vmatmul.mubr.f32.vlgmr.msra.gmra.mxu0 %v386_v33  ;;  %v458_v40 = vand.u32 4294901760, %v457_v36  ;;  %v465_v41 = vsub.f32 %v463_v35, %v464_v37  ;;  %561 = vmatprep.subr.mxu0 %v457_v36 }
  0x19   : > { %392 = vmatprep.mubr.f32.mxu0 %v1685_v2  ;;  %564 = vmatpush1.msra.mxu0 %v463_v35 }
  0x1a   : > { %v459_v43 = vsub.f32 %v457_v36, %v458_v40  ;;  %766 = vmatprep.subr.mxu0 %v458_v40  ;;  %v466_v44 = vand.u32 4294901760, %v465_v41 }
  0x1c   : > { %398 = vmatmul.mubr.f32.gmra.mxu0 %v397_v39  ;;  %v460_v45 = vand.u32 4294901760, %v459_v43 }
  0x1d   : > { %403 = vmatprep.mubr.f32.mxu0 %v1685_v2 }
  0x1e   : > { %461 = vmatprep.subr.mxu1 %v460_v45 }
  0x1f   : > { %467 = vmatpush1.msra.mxu1 %v466_v44 }
  0x20   : > { %409 = vmatmul.mubr.f32.gmra.mxu0 %v408_v46  ;;  %502 = vmatmul.mubr.f32.vlgmr.msra.gmra.mxu1 %v1754_v8 }
  0x21   : > { %414 = vmatprep.mubr.f32.mxu0 %v1685_v2  ;;  %507 = vmatprep.mubr.f32.mxu1 %v1685_v2 }
  0x22   : > { %661 = vmatprep.subr.mxu1 %v345_v32 }
  0x23   : > { %663 = vmatpush1.msra.mxu1 %v347_v26 }
  0x24   : > { %420 = vmatmul.mubr.f32.gmra.mxu0 %v419_v48  ;;  %509 = vmatmul.mubr.f32.gmra.mxu1 %v1756_v9 }
  0x25   : > { %514 = vmatprep.mubr.f32.mxu1 %v1685_v2  ;;  %597 = vmatprep.mubr.f32.mxu0 %v1685_v2 }
  0x26   : > { %863 = vmatprep.subr.mxu1 %v345_v32 }
  0x28   : > { %516 = vmatmul.mubr.f32.gmra.mxu1 %v1758_v13  ;;  %600 = vmatmul.mubr.f32.vlgmr.msra.gmra.mxu0 %v1765_v15 }
  0x29   : > { %521 = vmatprep.mubr.f32.mxu1 %v1685_v2  ;;  %605 = vmatprep.mubr.f32.mxu0 %v1685_v2 }
  0x2a   : > { %770 = vmatpush1.msra.mxu0 %v464_v37 }
  0x2c   : > { %523 = vmatmul.mubr.f32.gmra.mxu1 %v1781_v19  ;;  %608 = vmatmul.mubr.f32.gmra.mxu0 %v1768_v16 }
  0x2d   : > { %613 = vmatprep.mubr.f32.mxu0 %v1685_v2  ;;  %696 = vmatprep.mubr.f32.mxu1 %v1685_v2 }
  0x30   : > { %616 = vmatmul.mubr.f32.gmra.mxu0 %v1779_v18  ;;  %700 = vmatmul.mubr.f32.vlgmr.msra.gmra.mxu1 %v384_v22 }
  0x31   : > { %621 = vmatprep.mubr.f32.mxu0 %v1685_v2  ;;  %705 = vmatprep.mubr.f32.mxu1 %v1685_v2 }
  0x32   : > { %865 = vmatpush1.msra.mxu1 %v347_v26 }
  0x34   : > { %624 = vmatmul.mubr.f32.gmra.mxu0 %v1793_v30  ;;  %709 = vmatmul.mubr.f32.gmra.mxu1 %v395_v23 }
  0x35   : > { %714 = vmatprep.mubr.f32.mxu1 %v1685_v2  ;;  %803 = vmatprep.mubr.f32.mxu0 %v1685_v2 }
  0x38   : > { %718 = vmatmul.mubr.f32.gmra.mxu1 %v406_v29  ;;  %805 = vmatmul.mubr.f32.vlgmr.msra.gmra.mxu0 %v1754_v8 }
  0x39   : > { %723 = vmatprep.mubr.f32.mxu1 %v1685_v2  ;;  %810 = vmatprep.mubr.f32.mxu0 %v1685_v2 }
  0x3c   : > { %727 = vmatmul.mubr.f32.gmra.mxu1 %v417_v38  ;;  %812 = vmatmul.mubr.f32.gmra.mxu0 %v1756_v9 }
  0x3d   : > { %817 = vmatprep.mubr.f32.mxu0 %v1685_v2  ;;  %898 = vmatprep.mubr.f32.mxu1 %v1685_v2 }
  0x40   : > { %819 = vmatmul.mubr.f32.gmra.mxu0 %v1758_v13  ;;  %900 = vmatmul.mubr.f32.vlgmr.msra.gmra.mxu1 %v1754_v8 }
  0x41   : > { %824 = vmatprep.mubr.f32.mxu0 %v1685_v2  ;;  %905 = vmatprep.mubr.f32.mxu1 %v1685_v2 }
  0x44   : > { %826 = vmatmul.mubr.f32.gmra.mxu0 %v1781_v19  ;;  %907 = vmatmul.mubr.f32.gmra.mxu1 %v1756_v9 }
  0x45   : > { %912 = vmatprep.mubr.f32.mxu1 %v1685_v2  ;;  %1040 = vmatprep.mubr.f32.mxu0 %v1685_v2 }
  0x48   : > { %914 = vmatmul.mubr.f32.gmra.mxu1 %v1758_v13 }
  0x49   : > { %919 = vmatprep.mubr.f32.mxu1 %v1685_v2 }
  0x4c   : > { %921 = vmatmul.mubr.f32.gmra.mxu1 %v1781_v19 }
  0x4d   : > { %1156 = vmatprep.mubr.f32.mxu1 %v1685_v2 }
  0x8a   : > { %v283_v6 = vpop.permute.xlu1 %282  ;;  %v293_v11 = vpop.permute.xlu0 %292 }
  0x8e   : > { %v278_v14 = vpop.permute.xlu1 %277  ;;  %v288_v22 = vpop.permute.xlu0 %287 }
  0xd8   : > { %v388_v49 = vpop.f32.mrf.mxu0 }
  0xd9   : > { %v389_v17 = vadd.f32 %v388_v49, %v278_v14 }
  0xda   : > { %v390_v50 = vpop.f32.mrf.mxu0 }
  0xdb   : > { %v391_v21 = vadd.f32 %v390_v50, %v278_v14 }
  0xdc   : > { %v399_v51 = vpop.f32.mrf.mxu0 }
  0xdd   : > { %v400_v20 = vadd.f32 %v399_v51, %v283_v6 }
  0xde   : > { %v401_v52 = vpop.f32.mrf.mxu0 }
  0xdf   : > { %v402_v29 = vadd.f32 %v401_v52, %v283_v6 }
  0xe0   : > { %v410_v53 = vpop.f32.mrf.mxu0  ;;  %v503_v54 = vpop.f32.mrf.mxu1 }
  0xe1   : > { %v504_v26 = vadd.f32 %v503_v54, %v389_v17  ;;  %v411_v31 = vadd.f32 %v410_v53, %v288_v22 }
  0xe2   : > { %v412_v55 = vpop.f32.mrf.mxu0  ;;  %v505_v56 = vpop.f32.mrf.mxu1 }
  0xe3   : > { %v506_v25 = vadd.f32 %v505_v56, %v391_v21  ;;  %v413_v40 = vadd.f32 %v412_v55, %v288_v22 }
  0xe4   : > { %v421_v57 = vpop.f32.mrf.mxu0  ;;  %v510_v58 = vpop.f32.mrf.mxu1 }
  0xe5   : > { %v511_v30 = vadd.f32 %v510_v58, %v400_v20  ;;  %v422_v39 = vadd.f32 %v421_v57, %v293_v11 }
  0xe6   : > { %v423_v59 = vpop.f32.mrf.mxu0  ;;  %v512_v60 = vpop.f32.mrf.mxu1 }
  0xe7   : > { %v513_v36 = vadd.f32 %v512_v60, %v402_v29  ;;  %v424_v58 = vadd.f32 %v423_v59, %v293_v11 }
  0xe8   : > { %v517_v61 = vpop.f32.mrf.mxu1  ;;  %v601_v62 = vpop.f32.mrf.mxu0 }
  0xe9   : > { %v602_v33 = vadd.f32 %v601_v62, %v504_v26  ;;  %v518_v44 = vadd.f32 %v517_v61, %v411_v31  ;;  %v272_v31 = vld [vmem:[%s1976_s3] sm:$0xf] }
  0xea   : > { %v519_v63 = vpop.f32.mrf.mxu1  ;;  %v603_v0 = vpop.f32.mrf.mxu0 }
  0xeb   : > { %v604_v32 = vadd.f32 %v603_v0, %v506_v25  ;;  %v520_v48 = vadd.f32 %v519_v63, %v413_v40 }
  0xec   : > { %v524_v1 = vpop.f32.mrf.mxu1  ;;  %v609_v3 = vpop.f32.mrf.mxu0 }
  0xed   : > { %v610_v37 = vadd.f32 %v609_v3, %v511_v30  ;;  %v525_v60 = vadd.f32 %v524_v1, %v422_v39 }
  0xee   : > { %v526_v4 = vpop.f32.mrf.mxu1  ;;  %v611_v5 = vpop.f32.mrf.mxu0 }
  0xef   : > { %v612_v45 = vadd.f32 %v611_v5, %v513_v36  ;;  %v527_v63 = vadd.f32 %v526_v4, %v424_v58 }
  0xf0   : > { %v617_v7 = vpop.f32.mrf.mxu0  ;;  %v701_v8 = vpop.f32.mrf.mxu1 }
  0xf1   : > { %v702_v41 = vadd.f32 %v701_v8, %v602_v33  ;;  %v618_v52 = vadd.f32 %v617_v7, %v518_v44 }
  0xf2   : > { %v619_v9 = vpop.f32.mrf.mxu0  ;;  %v703_v10 = vpop.f32.mrf.mxu1 }
  0xf3   : > { %v704_v38 = vadd.f32 %v703_v10, %v604_v32  ;;  %v620_v57 = vadd.f32 %v619_v9, %v520_v48 }
  0xf4   : > { %v625_v12 = vpop.f32.mrf.mxu0  ;;  %v710_v13 = vpop.f32.mrf.mxu1 }
  0xf5   : > { %v711_v46 = vadd.f32 %v710_v13, %v610_v37  ;;  %v626_v6 = vadd.f32 %v625_v12, %v525_v60 }
  0xf6   : > { %v627_v15 = vpop.f32.mrf.mxu0  ;;  %v712_v16 = vpop.f32.mrf.mxu1 }
  0xf7   : > { %v713_v53 = vadd.f32 %v712_v16, %v612_v45  ;;  %v628_v17 = vadd.f32 %v627_v15, %v527_v63 }
  0xf8   : > { %v719_v18 = vpop.f32.mrf.mxu1  ;;  %v806_v19 = vpop.f32.mrf.mxu0 }
  0xf9   : > { %v807_v49 = vadd.f32 %v806_v19, %v702_v41  ;;  %v720_v0 = vadd.f32 %v719_v18, %v618_v52 }
  0xfa   : > { %v721_v23 = vpop.f32.mrf.mxu1  ;;  %v808_v24 = vpop.f32.mrf.mxu0 }
  0xfb   : > { %v809_v47 = vadd.f32 %v808_v24, %v704_v38  ;;  %v722_v7 = vadd.f32 %v721_v23, %v620_v57 }
  0xfc   : > { %v728_v27 = vpop.f32.mrf.mxu1  ;;  %v813_v28 = vpop.f32.mrf.mxu0 }
  0xfd   : > { %v814_v54 = vadd.f32 %v813_v28, %v711_v46  ;;  %v729_v59 = vadd.f32 %v728_v27, %v626_v6 }
  0xfe   : > { %v730_v34 = vpop.f32.mrf.mxu1  ;;  %v815_v35 = vpop.f32.mrf.mxu0 }
  0xff   : > { %v816_v61 = vadd.f32 %v815_v35, %v713_v53  ;;  %v731_v20 = vadd.f32 %v730_v34, %v628_v17  ;;  %v966_v34 = vsel %vm964_vm2, %v272_v31, 0 }
 0x100   : > { %v820_v42 = vpop.f32.mrf.mxu0  ;;  %v901_v43 = vpop.f32.mrf.mxu1  ;;  %v1855_v40 = vand.u32 4294901760, %v966_v34 }
 0x101   : > { %v1848_v55 = vadd.f32 %v901_v43, %v807_v49  ;;  %v821_v13 = vadd.f32 %v820_v42, %v720_v0 }
 0x102   : > { %v822_v50 = vpop.f32.mrf.mxu0  ;;  %v903_v51 = vpop.f32.mrf.mxu1 }
 0x103   : > { %v1846_v56 = vadd.f32 %v903_v51, %v809_v47  ;;  %v927_v1 = vmul.f32 0.70710677, %v1848_v55  ;;  %v823_v11 = vadd.f32 %v822_v50, %v722_v7  ;;  %v1858_v50 = vsub.f32 %v966_v34, %v1855_v40 }
 0x104   : > { %v908_v62 = vpop.f32.mrf.mxu1  ;;  %v827_v8 = vpop.f32.mrf.mxu0 }
 0x105   : > { %v928_v3 = vmul.f32 0.70710677, %v1846_v56  ;;  %v909_v5 = vadd.f32 %v908_v62, %v814_v54  ;;  %v828_v12 = vadd.f32 %v827_v8, %v729_v59 }
 0x106   : > { %v910_v10 = vpop.f32.mrf.mxu1  ;;  %v829_v21 = vpop.f32.mrf.mxu0 }
 0x107   : > { %v929_v14 = vmul.f32 0.70710677, %v909_v5  ;;  %v911_v16 = vadd.f32 %v910_v10, %v816_v61  ;;  %1645 = verf.f32 %v928_v3  ;;  %v830_v25 = vadd.f32 %v829_v21, %v731_v20 }
 0x108   : > { %v915_v9 = vpop.f32.mrf.mxu1 }
 0x109   : > { %v930_v18 = vmul.f32 0.70710677, %v911_v16  ;;  %v916_v19 = vadd.f32 %v915_v9, %v821_v13  ;;  %1647 = verf.f32 %v929_v14 }
 0x10a   : > { %v917_v4 = vpop.f32.mrf.mxu1 }
 0x10b   : > { %1649 = verf.f32 %v930_v18  ;;  %v931_v22 = vmul.f32 0.70710677, %v916_v19  ;;  %v918_v23 = vadd.f32 %v917_v4, %v823_v11 }
 0x10c   : > { %1651 = verf.f32 %v927_v1  ;;  %v922_v24 = vpop.f32.mrf.mxu1 }
 0x10d   : > { %1653 = verf.f32 %v931_v22  ;;  %v932_v15 = vmul.f32 0.70710677, %v918_v23  ;;  %v923_v26 = vadd.f32 %v922_v24, %v828_v12 }
 0x10e   : > { %v924_v27 = vpop.f32.mrf.mxu1 }
 0x10f   : > { %1655 = verf.f32 %v932_v15  ;;  %v933_v28 = vmul.f32 0.70710677, %v923_v26  ;;  %v925_v29 = vadd.f32 %v924_v27, %v830_v25 }
 0x111   : > { %1657 = verf.f32 %v933_v28  ;;  %v934_v30 = vmul.f32 0.70710677, %v925_v29 }
 0x113   : > { %1659 = verf.f32 %v934_v30 }
 0x114   : > { %v1646_v32 = vpop.eup %1645 }
 0x115   : > { %v944_v41 = vadd.f32 1.0, %v1646_v32 }
 0x116   : > { %v1648_v33 = vpop.eup %1647 }
 0x117   : > { %v945_v39 = vadd.f32 1.0, %v1648_v33  ;;  %v952_v51 = vmul.f32 %v944_v41, %v1846_v56 }
 0x118   : > { %v1650_v35 = vpop.eup %1649 }
 0x119   : > { %v1652_v36 = vpop.eup %1651  ;;  %v946_v37 = vadd.f32 1.0, %v1650_v35  ;;  %v953_v48 = vmul.f32 %v945_v39, %v909_v5  ;;  %v1043_v5 = vand.u32 4294901760, %v1858_v50  ;;  %v1871_v63 = vand.u32 4294901760, %v952_v51 }
 0x11a   : > { %v1654_v38 = vpop.eup %1653  ;;  %v943_v43 = vadd.f32 1.0, %v1652_v36 }
 0x11b   : > { %v947_v44 = vadd.f32 1.0, %v1654_v38  ;;  %v954_v45 = vmul.f32 %v946_v37, %v911_v16  ;;  %v1868_v3 = vand.u32 4294901760, %v953_v48  ;;  %v1044_v17 = vsub.f32 %v1858_v50, %v1043_v5 }
 0x11c   : > { %v1656_v42 = vpop.eup %1655  ;;  %v951_v58 = vmul.f32 %v943_v43, %v1848_v55  ;;  %v1898_v59 = vsub.f32 %v952_v51, %v1871_v63  ;;  %v962_v43 = vpop.permute.xlu0 %961 }
 0x11d   : > { %v948_v46 = vadd.f32 1.0, %v1656_v42  ;;  %v955_v49 = vmul.f32 %v947_v44, %v916_v19  ;;  %v1864_v57 = vand.u32 4294901760, %v954_v45  ;;  %v1892_v16 = vsub.f32 %v953_v48, %v1868_v3 }
 0x11e   : > { %v1658_v47 = vpop.eup %1657  ;;  %v1878_v8 = vand.u32 4294901760, %v951_v58  ;;  %v1045_v22 = vand.u32 4294901760, %v1044_v17  ;;  %v1114_v25 = vand.u32 4294901760, %v1898_v59 }
 0x11f   : > { %v956_v52 = vmul.f32 %v948_v46, %v918_v23  ;;  %v949_v53 = vadd.f32 1.0, %v1658_v47  ;;  %v1862_v60 = vand.u32 4294901760, %v955_v49  ;;  %v1884_v7 = vsub.f32 %v954_v45, %v1864_v57 }
 0x120   : > { %v1660_v54 = vpop.eup %1659  ;;  %v1905_v18 = vsub.f32 %v951_v58, %v1878_v8  ;;  %v1108_v4 = vand.u32 4294901760, %v1892_v16  ;;  %v1115_v32 = vsub.f32 %v1898_v59, %v1114_v25 }
 0x121   : > { %v1866_v62 = vand.u32 4294901760, %v956_v52  ;;  %v957_v0 = vmul.f32 %v949_v53, %v923_v26  ;;  %v950_v61 = vadd.f32 1.0, %v1660_v54  ;;  %v1881_v10 = vsub.f32 %v955_v49, %v1862_v60 }
 0x122   : > { %v1102_v21 = vand.u32 4294901760, %v1884_v7  ;;  %v1120_v15 = vand.u32 4294901760, %v1905_v18  ;;  %v1109_v30 = vsub.f32 %v1892_v16, %v1108_v4  ;;  %v1116_v37 = vand.u32 4294901760, %v1115_v32 }
 0x123   : > { %v1874_v56 = vsub.f32 %v956_v52, %v1866_v62  ;;  %v1876_v6 = vand.u32 4294901760, %v957_v0  ;;  %v958_v55 = vmul.f32 %v950_v61, %v925_v29  ;;  %v1096_v19 = vand.u32 4294901760, %v1881_v10 }
 0x124   : > { %v1103_v28 = vsub.f32 %v1884_v7, %v1102_v21  ;;  %v1121_v34 = vsub.f32 %v1905_v18, %v1120_v15  ;;  %v1110_v36 = vand.u32 4294901760, %v1109_v30 }
 0x125   : > { %v1887_v13 = vsub.f32 %v957_v0, %v1876_v6  ;;  %v1889_v14 = vand.u32 4294901760, %v958_v55  ;;  %v1090_v11 = vand.u32 4294901760, %v1874_v56  ;;  %v1097_v26 = vsub.f32 %v1881_v10, %v1096_v19 }
 0x126   : > { %v1104_v35 = vand.u32 4294901760, %v1103_v28  ;;  %v1122_v38 = vand.u32 4294901760, %v1121_v34 }
 0x127   : > { %v1084_v1 = vand.u32 4294901760, %v1887_v13  ;;  %v1077_v9 = vsub.f32 %v958_v55, %v1889_v14  ;;  %993 = vmatprep.subr.mxu0 %v1889_v14  ;;  %v1091_v24 = vsub.f32 %v1874_v56, %v1090_v11  ;;  %v1098_v33 = vand.u32 4294901760, %v1097_v26 }
 0x128   : > { %995 = vmatpush1.msra.mxu0 %v1876_v6 }
 0x129   : > { %997 = vmatprep.subr.mxu0 %v1866_v62  ;;  %v1078_v20 = vand.u32 4294901760, %v1077_v9  ;;  %v1085_v12 = vsub.f32 %v1887_v13, %v1084_v1  ;;  %v1092_v31 = vand.u32 4294901760, %v1091_v24 }
 0x12a   : > { %999 = vmatpush1.msra.mxu0 %v1862_v60 }
 0x12b   : > { %1001 = vmatprep.subr.mxu0 %v1864_v57  ;;  %v1079_v23 = vsub.f32 %v1077_v9, %v1078_v20  ;;  %v1086_v29 = vand.u32 4294901760, %v1085_v12 }
 0x12c   : > { %1003 = vmatpush1.msra.mxu0 %v1868_v3 }
 0x12d   : > { %1005 = vmatprep.subr.mxu0 %v1871_v63  ;;  %v1080_v27 = vand.u32 4294901760, %v1079_v23 }
 0x12e   : > { %1007 = vmatpush1.msra.mxu0 %v1878_v8 }
 0x12f   : > { %1046 = vmatmul.mubr.f32.vlgmr.msra.gmra.mxu0 %v1045_v22  ;;  %1081 = vmatprep.subr.mxu1 %v1080_v27 }
 0x130   : > { %1190 = vmatprep.subr.mxu0 %v1077_v9  ;;  %1087 = vmatpush1.msra.mxu1 %v1086_v29 }
 0x131   : > { %1193 = vmatpush1.msra.mxu0 %v1887_v13  ;;  %1093 = vmatprep.subr.mxu1 %v1092_v31 }
 0x132   : > { %1196 = vmatprep.subr.mxu0 %v1874_v56  ;;  %1099 = vmatpush1.msra.mxu1 %v1098_v33 }
 0x133   : > { %1199 = vmatpush1.msra.mxu0 %v1881_v10  ;;  %1105 = vmatprep.subr.mxu1 %v1104_v35 }
 0x134   : > { %1202 = vmatprep.subr.mxu0 %v1884_v7  ;;  %1111 = vmatpush1.msra.mxu1 %v1110_v36 }
 0x135   : > { %1205 = vmatpush1.msra.mxu0 %v1892_v16  ;;  %1117 = vmatprep.subr.mxu1 %v1116_v37 }
 0x136   : > { %1208 = vmatprep.subr.mxu0 %v1898_v59  ;;  %1123 = vmatpush1.msra.mxu1 %v1122_v38 }
 0x137   : > { %1211 = vmatpush1.msra.mxu0 %v1905_v18  ;;  %1158 = vmatmul.mubr.f32.vlgmr.msra.gmra.mxu1 %v1855_v40 }
 0x138   : > { %1244 = vmatprep.mubr.f32.mxu0 %v1685_v2  ;;  %1278 = vmatprep.subr.mxu1 %v1889_v14 }
 0x139   : > { %1362 = vmatprep.subr.mxu0 %v1078_v20  ;;  %1247 = vmatmul.mubr.f32.vlgmr.msra.gmra.mxu0 %v1858_v50 }
 0x13a   : > { %1280 = vmatpush1.msra.mxu1 %v1876_v6  ;;  %1366 = vmatpush1.msra.mxu0 %v1084_v1 }
 0x13b   : > { %1282 = vmatprep.subr.mxu1 %v1866_v62  ;;  %1370 = vmatprep.subr.mxu0 %v1090_v11 }
 0x13c   : > { %1284 = vmatpush1.msra.mxu1 %v1862_v60  ;;  %1374 = vmatpush1.msra.mxu0 %v1096_v19 }
 0x13d   : > { %1286 = vmatprep.subr.mxu1 %v1864_v57  ;;  %1378 = vmatprep.subr.mxu0 %v1102_v21 }
 0x13e   : > { %1288 = vmatpush1.msra.mxu1 %v1868_v3  ;;  %1382 = vmatpush1.msra.mxu0 %v1108_v4 }
 0x13f   : > { %1290 = vmatprep.subr.mxu1 %v1871_v63  ;;  %1386 = vmatprep.subr.mxu0 %v1114_v25 }
 0x140   : > { %1292 = vmatpush1.msra.mxu1 %v1878_v8  ;;  %1325 = vmatprep.mubr.f32.mxu1 %v1685_v2 }
 0x141   : > { %1390 = vmatpush1.msra.mxu0 %v1120_v15  ;;  %1329 = vmatmul.mubr.f32.vlgmr.msra.gmra.mxu1 %v1043_v5 }
 0x142   : > { %1456 = vmatprep.subr.mxu1 %v1889_v14  ;;  %1423 = vmatprep.mubr.f32.mxu0 %v1685_v2 }
 0x143   : > { %1458 = vmatpush1.msra.mxu1 %v1876_v6  ;;  %1425 = vmatmul.mubr.f32.vlgmr.msra.gmra.mxu0 %v1855_v40 }
 0x144   : > { %1460 = vmatprep.subr.mxu1 %v1866_v62  ;;  %1503 = vmatprep.mubr.f32.mxu1 %v1685_v2 }
 0x145   : > { %1462 = vmatpush1.msra.mxu1 %v1862_v60 }
 0x146   : > { %1464 = vmatprep.subr.mxu1 %v1864_v57 }
 0x147   : > { %1466 = vmatpush1.msra.mxu1 %v1868_v3 }
 0x148   : > { %1468 = vmatprep.subr.mxu1 %v1871_v63 }
 0x149   : > { %1470 = vmatpush1.msra.mxu1 %v1878_v8 }
 0x14a   : > { %1505 = vmatmul.mubr.f32.vlgmr.msra.gmra.mxu1 %v1855_v40 }
 0x1ef   : > { %v1047_v39 = vpop.f32.mrf.mxu0 }
 0x1f0   : > { %v1048_v46 = vadd.f32 %v1047_v39, %v962_v43 }
 0x1f1   : > { %v1049_v42 = vpop.f32.mrf.mxu0 }
 0x1f2   : > { %v1050_v2 = vadd.f32 %v1049_v42, %v962_v43 }
 0x1f7   : > { %v1159_v41 = vpop.f32.mrf.mxu1 }
 0x1f8   : > { %v1160_v47 = vadd.f32 %v1159_v41, %v1048_v46 }
 0x1f9   : > { %v1161_v44 = vpop.f32.mrf.mxu1  ;;  %v1248_v45 = vpop.f32.mrf.mxu0 }
 0x1fa   : > { %v1162_v48 = vadd.f32 %v1161_v44, %v1050_v2  ;;  %v1249_v53 = vadd.f32 %v1248_v45, %v1160_v47 }
 0x1fb   : > { %v1250_v50 = vpop.f32.mrf.mxu0 }
 0x1fc   : > { %v1251_v54 = vadd.f32 %v1250_v50, %v1162_v48 }
 0x201   : > { %v1330_v49 = vpop.f32.mrf.mxu1 }
 0x202   : > { %v1331_v58 = vadd.f32 %v1330_v49, %v1249_v53 }
 0x203   : > { %v1332_v51 = vpop.f32.mrf.mxu1  ;;  %v1426_v52 = vpop.f32.mrf.mxu0 }
 0x204   : > { %v1333_v60 = vadd.f32 %v1332_v51, %v1251_v54  ;;  %v1427_v62 = vadd.f32 %v1426_v52, %v1331_v58 }
 0x205   : > { %v1428_v40 = vpop.f32.mrf.mxu0 }
 0x206   : > { %v1429_v0 = vadd.f32 %v1428_v40, %v1333_v60 }
 0x20a   : > { %v1506_v57 = vpop.f32.mrf.mxu1 }
 0x20b   : > { %v1507_v3 = vadd.f32 %v1506_v57, %v1427_v62 }
 0x20c   : > { %v1508_v61 = vpop.f32.mrf.mxu1 }
 0x20d   : > { %v1509_v5 = vadd.f32 %v1508_v61, %v1429_v0 }
 0x20f   : > { %v1513_v63 = vcombine.low %v1507_v3, %v1509_v5 }
 0x211   : > { %1515 = vst [vmem:[%s262_s27] sm:$0xff] %v1513_v63 }
 0x212 PF: > { %s15_s20 = sadd.s32 1, %s1683_s20   ;;  %s1979_s18 = smov %s1679_s19 }
 0x213   : > { %p12_p5 = scmp.ge.s32.totalorder %s15_s20, 4   ;;  %s1980_s19 = smov %s1982_s21 }
 0x215   :  { %14 = sbr.rel (!%p12_p5) target bundleno = 2 (0x2), region = 70 }

</bundles_post_ra>
